<compile_context>
chip_gen: v6e
topology: v6e:2x2x1
jax: 0.10.0
libtpu: 0.0.40
codegen_flags: <defaults>
</compile_context>

<pallas_src>
import jax
import jax.numpy as jnp
from jax.experimental import pallas as pl
from jax.experimental.pallas import tpu as pltpu


# ------------------------------------------------------------------ kernels --

def _resblock_fused_kernel(x_mm_ref, w_ref, b_ref, x_res_ref, o_ref):
    """Single-pass variant: full reduction dim per step (no accumulator)."""
    h = jnp.dot(x_mm_ref[...], w_ref[...], preferred_element_type=jnp.float32)
    h = h + b_ref[...]                              # bias broadcast (1, tn)
    silu = h / (1.0 + jnp.exp(-h))                  # SiLU = h * sigmoid(h)
    o_ref[...] = (x_res_ref[...].astype(jnp.float32) + silu).astype(o_ref.dtype)


def _resblock_ktiled_kernel(x_mm_ref, w_ref, b_ref, x_res_ref, o_ref, acc_ref):
    """Reduction-tiled variant with an f32 VMEM accumulator (large H only)."""
    k = pl.program_id(2)

    @pl.when(k == 0)
    def _init():
        acc_ref[...] = jnp.zeros_like(acc_ref)

    acc_ref[...] += jnp.dot(x_mm_ref[...], w_ref[...],
                            preferred_element_type=jnp.float32)

    @pl.when(k == pl.num_programs(2) - 1)
    def _finalize():
        h = acc_ref[...] + b_ref[...]
        silu = h / (1.0 + jnp.exp(-h))
        o_ref[...] = (x_res_ref[...].astype(jnp.float32) + silu).astype(o_ref.dtype)


# ------------------------------------------------------------------ helpers --

def _round_up(x, m):
    return ((x + m - 1) // m) * m


def _cdiv(a, b):
    return (a + b - 1) // b


def _aligned_divisors(dim, align=128):
    """Divisors of `dim` that are multiples of `align`, descending."""
    out = []
    t = (dim // align) * align
    while t >= align:
        if dim % t == 0:
            out.append(t)
        t -= align
    return out


# ------------------------------------------------------------------ wrapper --

def resblock(x, w_t, b, *, tm_target=512, tn_target=512, tk_target=2048,
             vmem_budget=40 << 20, force_reduction_tiling=False):
    """x: [B, H]; w_t: [H, H] (PyTorch weight transposed, i.e. [in, out]);
    b: [H].  Returns x + SiLU(x @ w_t + b).  The contraction runs on the MXU
    in bf16 with f32 accumulation; bias / SiLU / residual stay in f32."""
    B, H = x.shape
    assert w_t.shape == (H, H) and b.shape == (H,)
    out_dtype = x.dtype
    x_bytes = jnp.dtype(x.dtype).itemsize
    out_bytes = jnp.dtype(out_dtype).itemsize

    # ---- row tiling: balanced tiles, minimal padding waste -----------------
    b_pad16 = _round_up(B, 16)
    if b_pad16 <= tm_target:
        tm, num_i = b_pad16, 1                       # single row tile: W streams once
    else:
        num_i = _cdiv(b_pad16, tm_target)
        tm = _round_up(_cdiv(b_pad16, num_i), 16)
    b_pad = tm * num_i

    # ---- double-buffered working-set estimate (bytes) ----------------------
    def wset(tn, tk, has_acc):
        s = 2 * tm * tk * 2                          # x (bf16) matmul tiles
        s += 2 * tk * tn * 2                         # weight (bf16) tiles
        s += 2 * tm * tn * x_bytes                   # residual tiles
        s += 2 * tm * tn * out_bytes                 # output tiles
        s += 2 * 8 * tn * 4                          # bias tiles (sublane-padded)
        if has_acc:
            s += tm * tn * 4                         # f32 accumulator scratch
        return s

    # ---- H padding: only needed if we must tile an unaligned hidden dim ----
    Hp = H
    if H > 128 and H % 128 != 0 and wset(H, H, False) > vmem_budget:
        Hp = _round_up(H, 128)

    # ---- column-tile candidates ---------------------------------------------
    divisors = _aligned_divisors(Hp)
    tn_cands = [t for t in divisors if t <= max(tn_target, 128)]
    if not tn_cands or (Hp <= tn_target and Hp not in tn_cands):
        tn_cands = [Hp] + tn_cands
    if num_i == 1:
        # v7x megacore: prefer >= 2 column tiles so both TensorCores get work.
        multi = [t for t in tn_cands if Hp // t >= 2]
        if multi:
            tn_cands = multi

    # ---- pick (tn, tk, fused?) under the VMEM budget ------------------------
    choice = None
    if not force_reduction_tiling:
        for tn in tn_cands:                          # largest tn first, tk = Hp
            if wset(tn, Hp, has_acc=False) <= vmem_budget:
                choice = (tn, Hp, True)
                break
    if choice is None:
        tk_cands = [t for t in divisors if t <= max(tk_target, 128)] or [Hp]
        for tn in tn_cands:
            for tk in tk_cands:
                if wset(tn, tk, has_acc=True) <= vmem_budget:
                    choice = (tn, tk, False)
                    break
            if choice is not None:
                break
    if choice is None:                               # last resort: smallest tiles
        choice = (tn_cands[-1], (divisors or [Hp])[-1], False)
    tn, tk, fused = choice
    num_j = Hp // tn
    num_k = Hp // tk

    # ---- padded / pre-cast operands -----------------------------------------
    xp = x
    if b_pad != B or Hp != H:
        xp = jnp.pad(x, ((0, b_pad - B), (0, Hp - H)))
    x_mm = xp.astype(jnp.bfloat16)                   # MXU operand, cast once
    w_p = w_t.astype(jnp.bfloat16)                   # enforce the bf16 fast path
    if Hp != H:
        w_p = jnp.pad(w_p, ((0, Hp - H), (0, Hp - H)))
    b_p = b.astype(jnp.float32).reshape(1, H)
    if Hp != H:
        b_p = jnp.pad(b_p, ((0, 0), (0, Hp - H)))

    vmem_limit = int(min(64 << 20,
                         max(32 << 20, wset(tn, tk, not fused) + (8 << 20))))

    if fused:
        grid_spec = pltpu.PrefetchScalarGridSpec(
            num_scalar_prefetch=0,
            grid=(num_i, num_j),
            in_specs=[
                pl.BlockSpec((tm, Hp), lambda i, j: (i, 0)),   # x bf16 (full K)
                pl.BlockSpec((Hp, tn), lambda i, j: (0, j)),   # weight panel
                pl.BlockSpec((1, tn), lambda i, j: (0, j)),    # bias
                pl.BlockSpec((tm, tn), lambda i, j: (i, j)),   # residual x
            ],
            out_specs=pl.BlockSpec((tm, tn), lambda i, j: (i, j)),
        )
        kernel = _resblock_fused_kernel
        dim_sem = ("parallel", "parallel")
    else:
        grid_spec = pltpu.PrefetchScalarGridSpec(
            num_scalar_prefetch=0,
            grid=(num_i, num_j, num_k),
            in_specs=[
                pl.BlockSpec((tm, tk), lambda i, j, k: (i, k)),   # x bf16
                pl.BlockSpec((tk, tn), lambda i, j, k: (k, j)),   # weight tile
                pl.BlockSpec((1, tn), lambda i, j, k: (0, j)),    # bias
                pl.BlockSpec((tm, tn), lambda i, j, k: (i, j)),   # residual x
            ],
            out_specs=pl.BlockSpec((tm, tn), lambda i, j, k: (i, j)),
            scratch_shapes=[pltpu.VMEM((tm, tn), jnp.float32)],
        )
        kernel = _resblock_ktiled_kernel
        dim_sem = ("parallel", "parallel", "arbitrary")

    out = pl.pallas_call(
        kernel,
        out_shape=jax.ShapeDtypeStruct((b_pad, Hp), out_dtype),
        grid_spec=grid_spec,
        compiler_params=pltpu.CompilerParams(
            dimension_semantics=dim_sem,
            vmem_limit_bytes=vmem_limit),
    )(x_mm, w_p, b_p, xp)

    if b_pad != B or Hp != H:
        out = out[:B, :H]
    return out


# --------------------------------------------------------------------- test --

if __name__ == "__main__":
    key = jax.random.PRNGKey(0)
    kx, kw, kb = jax.random.split(key, 3)

    # --- Case 1: small module-sized problem (hidden=32), fused kernel -------
    B1, H1 = 4, 32
    x1 = jax.random.normal(kx, (B1, H1), dtype=jnp.float32)
    bound1 = 1.0 / (H1 ** 0.5)
    b1 = jax.random.uniform(kb, (H1,), jnp.float32, minval=-bound1, maxval=bound1)

    # 1a: the module's actual init (zero weight) -> x + SiLU(bias).
    w1_zero_t = jnp.zeros((H1, H1), dtype=jnp.float32)
    out1 = jax.block_until_ready(resblock(x1, w1_zero_t, b1))
    ref1 = x1 + b1 * jax.nn.sigmoid(b1)
    assert jnp.allclose(out1, ref1, atol=2e-2, rtol=2e-2), "mismatch (zero weight)"

    # 1b: random weight so the fused MXU path is exercised.
    w1 = jax.random.uniform(kw, (H1, H1), jnp.float32, minval=-bound1, maxval=bound1)
    out1b = jax.block_until_ready(resblock(x1, w1.T, b1))
    h1 = jnp.dot(x1.astype(jnp.bfloat16), w1.T.astype(jnp.bfloat16),
                 preferred_element_type=jnp.float32) + b1
    ref1b = x1 + h1 * jax.nn.sigmoid(h1)
    assert jnp.allclose(out1b, ref1b, atol=2e-2, rtol=2e-2), "mismatch (fused)"

    # --- Case 2: k-tiled fallback on a multi-program grid (3, 2, 2) ---------
    B2, H2 = 40, 256
    x2 = jax.random.normal(kx, (B2, H2), dtype=jnp.float32)
    bound2 = 1.0 / (H2 ** 0.5)
    b2 = jax.random.uniform(kb, (H2,), jnp.float32, minval=-bound2, maxval=bound2)
    w2 = jax.random.uniform(kw, (H2, H2), jnp.float32, minval=-bound2, maxval=bound2)
    out2 = jax.block_until_ready(
        resblock(x2, w2.T, b2, tm_target=16, tn_target=128, tk_target=128,
                 force_reduction_tiling=True))
    h2 = jnp.dot(x2.astype(jnp.bfloat16), w2.T.astype(jnp.bfloat16),
                 preferred_element_type=jnp.float32) + b2
    ref2 = x2 + h2 * jax.nn.sigmoid(h2)
    assert jnp.allclose(out2, ref2, atol=2e-2, rtol=2e-2), "mismatch (k-tiled)"

    print("KERNEL_OK")
</pallas_src>

<mosaic_0001>
module attributes {stable_mosaic.version = 11 : i64} {
  func.func @_resblock_fused_kernel(%arg0: i32, %arg1: i32, %arg2: memref<16x32xbf16, #tpu.memory_space<vmem>>, %arg3: memref<32x32xbf16, #tpu.memory_space<vmem>>, %arg4: memref<1x32xf32, #tpu.memory_space<vmem>>, %arg5: memref<16x32xf32, #tpu.memory_space<vmem>>, %arg6: memref<16x32xf32, #tpu.memory_space<vmem>>) attributes {dimension_semantics = [#tpu.dimension_semantics<parallel>, #tpu.dimension_semantics<parallel>], iteration_bounds = array<i64: 1, 1>, scalar_prefetch = 0 : i64, scratch_operands = 0 : i64, tpu.core_type = #tpu.core_type<tc>, window_params = [{transform_indices = @transform_0, window_bounds = array<i64: 16, 32>}, {transform_indices = @transform_1, window_bounds = array<i64: 32, 32>}, {transform_indices = @transform_2, window_bounds = array<i64: 1, 32>}, {transform_indices = @transform_3, window_bounds = array<i64: 16, 32>}, {transform_indices = @transform_4, window_bounds = array<i64: 16, 32>}]} {
    %c0 = arith.constant 0 : index
    %c0_0 = arith.constant 0 : index
    %0 = vector.load %arg2[%c0, %c0_0] : memref<16x32xbf16, #tpu.memory_space<vmem>>, vector<16x32xbf16>
    %c0_1 = arith.constant 0 : index
    %c0_2 = arith.constant 0 : index
    %1 = vector.load %arg3[%c0_1, %c0_2] : memref<32x32xbf16, #tpu.memory_space<vmem>>, vector<32x32xbf16>
    %cst = arith.constant dense<0.000000e+00> : vector<16x32xf32>
    %2 = tpu.matmul %0, %1, %cst {dimension_numbers = #tpu.dot_dimension_numbers<[1], [0], [0], [1], [0, 0, 1, 1], [], []>} : vector<16x32xbf16>, vector<32x32xbf16>, vector<16x32xf32> -> vector<16x32xf32>
    %c0_3 = arith.constant 0 : index
    %c0_4 = arith.constant 0 : index
    %3 = vector.load %arg4[%c0_3, %c0_4] : memref<1x32xf32, #tpu.memory_space<vmem>>, vector<1x32xf32>
    %4 = vector.broadcast %3 : vector<1x32xf32> to vector<16x32xf32>
    %5 = arith.addf %2, %4 : vector<16x32xf32>
    %cst_5 = arith.constant 0.000000e+00 : f32
    %6 = vector.broadcast %cst_5 : f32 to vector<16x32xf32>
    %7 = arith.subf %6, %5 : vector<16x32xf32>
    %8 = math.exp %7 : vector<16x32xf32>
    %cst_6 = arith.constant 1.000000e+00 : f32
    %9 = vector.broadcast %cst_6 : f32 to vector<16x32xf32>
    %10 = arith.addf %9, %8 : vector<16x32xf32>
    %11 = arith.divf %5, %10 : vector<16x32xf32>
    %c0_7 = arith.constant 0 : index
    %c0_8 = arith.constant 0 : index
    %12 = vector.load %arg5[%c0_7, %c0_8] : memref<16x32xf32, #tpu.memory_space<vmem>>, vector<16x32xf32>
    %13 = arith.addf %12, %11 : vector<16x32xf32>
    %c0_9 = arith.constant 0 : index
    %c0_10 = arith.constant 0 : index
    %14 = vector.load %arg6[%c0_9, %c0_10] : memref<16x32xf32, #tpu.memory_space<vmem>>, vector<16x32xf32>
    tpu.vector_store %arg6[%c0_9, %c0_10], %13 {strides = array<i32>} : memref<16x32xf32, #tpu.memory_space<vmem>>, vector<16x32xf32>,
    return
  }
  func.func @transform_0(%arg0: i32, %arg1: i32) -> (i32, i32) {
    %c0_i32 = arith.constant 0 : i32
    %c0_i32_0 = arith.constant 0 : i32
    return %arg0, %c0_i32 : i32, i32
  }
  func.func @transform_1(%arg0: i32, %arg1: i32) -> (i32, i32) {
    %c0_i32 = arith.constant 0 : i32
    %c0_i32_0 = arith.constant 0 : i32
    return %c0_i32, %arg1 : i32, i32
  }
  func.func @transform_2(%arg0: i32, %arg1: i32) -> (i32, i32) {
    %c0_i32 = arith.constant 0 : i32
    %c0_i32_0 = arith.constant 0 : i32
    return %c0_i32, %arg1 : i32, i32
  }
  func.func @transform_3(%arg0: i32, %arg1: i32) -> (i32, i32) {
    %c0_i32 = arith.constant 0 : i32
    return %arg0, %arg1 : i32, i32
  }
  func.func @transform_4(%arg0: i32, %arg1: i32) -> (i32, i32) {
    %c0_i32 = arith.constant 0 : i32
    return %arg0, %arg1 : i32, i32
  }
}

</mosaic_0001>

<bundles_post_ra>
// kernel: tpu_custom_call.1
= control target key start
LH: loop header
LB: loop body
LE: loop exit
PB: predicated region body
PF: predicated region fallthrough
CT: control target
= control target key end

     0   :  { %9 = vsyncpa [#allocation3], 0  ;;  %s353_s0 = inlined_call_operand.hbm [shape: bf16[16,32], index: 0, kind: input, shape index: {}]   ;;  %s354_s1 = inlined_call_operand.hbm [shape: bf16[32,32], index: 1, kind: input, shape index: {}]   ;;  %s355_s2 = inlined_call_operand.vmem [shape: f32[1,32], index: 2, kind: input, shape index: {}]   ;;  %s356_s3 = inlined_call_operand.hbm [shape: f32[16,32], index: 3, kind: input, shape index: {}]   ;;  %s357_s4 = inlined_call_operand.hbm [shape: f32[16,32], index: 4, kind: output, shape index: {}]  }
   0x1   :  { %10 = vsyncpa [#allocation6], 0 }
   0x2   :  { %11 = vsyncpa [#allocation4], 0  ;;  %s294_s15 = smov [#allocation5]   ;;  %s295_s17 = smov [#allocation2]  }
   0x3   :  { %s29_s16 = sshll.u32 %s294_s15, 4  ;;  %s17_s18 = sshll.u32 %s295_s17, 4  ;;  %s30_s16 = int_to_ptr.vmem [resolvable:$true] %s29_s16  ;;  %s18_s18 = int_to_ptr.vmem [resolvable:$true] %s17_s18 }
   0x4   :  { %s216_s19 = scalar_lea.vmem %s30_s16, 256  ;;  %p221_p1 = scmp.lt.s32.totalorder %s30_s16, %s30_s16 }
   0x5   :  { %p217_p0 = scmp.ne.s32.totalorder %s30_s16, %s216_s19  ;;  %p222_p2 = scmp.lt.s32.totalorder %s216_s19, %s216_s19 }
   0x7   :  { %p223_p3 = por %p222_p2, %p221_p1 }
   0x9   :  { %p224_p4 = pnand %p223_p3, %p217_p0 }
   0xb   :  { %227 = shalt.err (!%p224_p4)
}
   0xc   :  { %s296_s20 = smov 64   ;;  %s297_s21 = smov 4  }
   0xd   :  { %35 = dma.hbm_to_vmem [thread:$0]  %s354_s1, 256, %s30_s16, [#allocation6], %s296_s20, %s296_s20, %s297_s21  }
   0xe   :  { %s236_s24 = scalar_lea.vmem %s18_s18, 128  ;;  %p241_p6 = scmp.lt.s32.totalorder %s18_s18, %s18_s18 }
   0xf   :  { %p237_p5 = scmp.ne.s32.totalorder %s18_s18, %s236_s24  ;;  %p242_p7 = scmp.lt.s32.totalorder %s236_s24, %s236_s24 }
  0x11   :  { %p243_p8 = por %p242_p7, %p241_p6 }
  0x13   :  { %p244_p9 = pnand %p243_p8, %p237_p5 }
  0x15   :  { %247 = shalt.err (!%p244_p9)
}
  0x16   :  { %23 = dma.hbm_to_vmem [thread:$0]  %s353_s0, 128, %s18_s18, [#allocation3], %s296_s20, %s296_s20, %s297_s21  }
  0x17   :  { %s298_s27 = smov [#allocation7]  }
  0x18   :  { %s43_s28 = sshll.u32 %s298_s27, 4  ;;  %s44_s28 = int_to_ptr.vmem [resolvable:$true] %s43_s28 }
  0x19   :  { %s256_s29 = scalar_lea.vmem %s44_s28, 256  ;;  %p261_p11 = scmp.lt.s32.totalorder %s44_s28, %s44_s28 }
  0x1a   :  { %p257_p10 = scmp.ne.s32.totalorder %s44_s28, %s256_s29  ;;  %p262_p12 = scmp.lt.s32.totalorder %s256_s29, %s256_s29 }
  0x1c   :  { %p263_p13 = por %p262_p12, %p261_p11 }
  0x1e   :  { %p264_p0 = pnand %p263_p13, %p257_p10 }
  0x20   :  { %267 = shalt.err (!%p264_p0)
}
  0x21   :  { %s299_s1 = smov 128   ;;  %s300_s30 = smov 8  }
  0x22   :  { %49 = dma.hbm_to_vmem [thread:$0]  %s356_s3, 256, %s44_s28, [#allocation6], %s299_s1, %s299_s1, %s300_s30  }
  0x23   :  { %288 = dma.done.wait [#allocation3], 128  }
  0x24   :  { %289 = vsyncadd [#allocation3], 4294967168 }
  0x25   :  { %290 = dma.done.wait [#allocation6], 512  }
  0x26   :  { %291 = vsyncadd [#allocation6], 4294966784  ;;  %v301_v0 = vmov 0.0   ;;  %vm302_vm0 = vmmov 0   ;;  %v197_v1 = vld [vmem:[#allocation5 + $0x8] sm:$0xff]   ;;  %v198_v2 = vld [vmem:[#allocation5] sm:$0xff]  }
  0x27   :  { %179 = vmatprep.subr.bf16.mxu0 %v301_v0  ;;  %183 = vmatprep.mubr.msk.bf16.mxu0 %vm302_vm0, %v301_v0  ;;  %v199_v3 = vld [vmem:[#allocation2] sm:$0xff]   ;;  %vm90_vm1 = vcmask 261120   ;;  %v147_v20 = vld [vmem:[#allocation7] sm:$0xff] }
  0x28   :  { %180 = vmatpush3.bf16.msra.mxu0 %v197_v1  ;;  %v171_v4 = vld [vmem:[%s355_s2] ss:$0 sm:$0xff]  ;;  %s303_s2 = smov [#allocation8]  }
  0x29   :  { %181 = vmatprep.subr.bf16.mxu0 %v301_v0  ;;  %v148_v24 = vld [vmem:[#allocation7 + $0x8] sm:$0xff]  ;;  %s158_s3 = sshll.u32 %s303_s2, 4  ;;  %s159_s3 = int_to_ptr.vmem [resolvable:$true] %s158_s3 }
  0x2a   :  { %s268_s8 = scalar_lea.vmem %s159_s3, 256  ;;  %p273_p2 = scmp.lt.s32.totalorder %s159_s3, %s159_s3 }
  0x2b   :  { %p269_p1 = scmp.ne.s32.totalorder %s159_s3, %s268_s8  ;;  %p274_p3 = scmp.lt.s32.totalorder %s268_s8, %s268_s8 }
  0x2c   :  { %182 = vmatpush3.bf16.msra.mxu0 %v198_v2 }
  0x2d   :  { %p275_p4 = por %p274_p3, %p273_p2 }
  0x2f   :  { %184 = vmatmul.mubr.msk.bf16.vlgmr.msra.gmra.mxu0 %vm90_vm1, %v199_v3  ;;  %p276_p5 = pnand %p275_p4, %p269_p1 }
  0xef   :  { %v128_v5 = vpop.f32.mrf.mxu0 }
  0xf0   :  { %v129_v6 = vadd.f32 %v171_v4, %v128_v5 }
  0xf1   :  { %v185_v7 = vpop.f32.mrf.mxu0 }
  0xf2   :  { %v135_v8 = vsub.f32 0.0, %v129_v6 }
  0xf3   :  { %v131_v9 = vpop.f32.mrf.mxu0 }
  0xf4   :  { %v137_v10 = vmul.f32 1.442695, %v135_v8  ;;  %v132_v11 = vadd.f32 %v171_v4, %v131_v9 }
  0xf5   :  { %v186_v12 = vpop.f32.mrf.mxu0 }
  0xf6   :  { %200 = vpow2.f32 %v137_v10  ;;  %v136_v13 = vsub.f32 0.0, %v132_v11 }
  0xf8   :  { %v139_v14 = vmul.f32 1.442695, %v136_v13 }
  0xfa   :  { %202 = vpow2.f32 %v139_v14 }
 0x103   :  { %v201_v15 = vpop.eup %200 }
 0x104   :  { %v141_v16 = vadd.f32 1.0, %v201_v15 }
 0x106   :  { %204 = vrcp.f32 %v141_v16 }
 0x107   :  { %v203_v17 = vpop.eup %202 }
 0x108   :  { %v142_v18 = vadd.f32 1.0, %v203_v17 }
 0x10a   :  { %206 = vrcp.f32 %v142_v18 }
 0x113   :  { %v205_v19 = vpop.eup %204 }
 0x114   :  { %v144_v21 = vmul.f32 %v205_v19, %v129_v6 }
 0x116   :  { %v149_v22 = vadd.f32 %v147_v20, %v144_v21 }
 0x117   :  { %v207_v23 = vpop.eup %206 }
 0x118   :  { %151 = vst.msk [vmem:[#allocation8] sm:$0xff] %vm90_vm1, %v149_v22  ;;  %v146_v25 = vmul.f32 %v207_v23, %v132_v11 }
 0x11a   :  { %v150_v26 = vadd.f32 %v148_v24, %v146_v25 }
 0x11c   :  { %152 = vst.msk [vmem:[#allocation8 + $0x8] sm:$0xff] %vm90_vm1, %v150_v26 }
 0x11d   :  { %279 = shalt.err (!%p276_p5)
}
 0x11e   :  { %164 = dma.vmem_to_hbm [thread:$0]  %s159_s3, 256, %s357_s4, [#allocation4], %s299_s1, %s299_s1, %s300_s30  }
 0x11f   :  { %292 = dma.done.wait [#allocation4], 256  }
 0x120   :  { %293 = vsyncadd [#allocation4], 4294967040 }
 0x121   :  { %168 = vsyncpa [#allocation3], 1 }
 0x122   :  { %169 = vsyncpa [#allocation6], 1 }
 0x123   :  { %170 = vsyncpa [#allocation4], 1 }

</bundles_post_ra>
